<compile_context>
chip_gen: v7x
topology: tpu7x:2x2x1
jax: 0.10.0
libtpu: 0.0.40
codegen_flags: <defaults>
</compile_context>

<pallas_src>
import numpy as np
import jax
import jax.numpy as jnp
from jax.experimental import pallas as pl
from jax.experimental.pallas import tpu as pltpu


# PyTorch concat order of the 8 neighbours, as (pd, ph, pw) parities.
_PT_ORDER = ((0, 0, 0), (1, 0, 0), (0, 1, 0), (0, 0, 1),
             (1, 1, 0), (1, 0, 1), (0, 1, 1), (1, 1, 1))


# ----------------------------------------------------------------------------
# Kernel: fused 2x2x2 gather + LayerNorm(8C) + Linear(8C -> 2C, bias free)
# ----------------------------------------------------------------------------
def _patch_merge_kernel(x_ref, w_ref, aff_ref, o_ref):
    # x_ref  : (G, 2, H2, 2, W2, 2C)  raw merged-input slab, parity dims intact
    # w_ref  : (8C, 2C)  gamma-folded, data-order-permuted reduction weight
    # aff_ref: (2, 2C) f32; row0 = colsum(gamma*W), row1 = beta @ W
    # o_ref  : (G*H2*W2, 2C)
    G, _, H2, _, W2, C2 = x_ref.shape
    n = G * H2 * W2
    inv_feat = 1.0 / (4 * C2)                      # 1 / (8C)

    acc = jnp.zeros((n, C2), jnp.float32)
    s1 = jnp.zeros((n, 1), jnp.float32)
    s2 = jnp.zeros((n, 1), jnp.float32)
    # (pd, ph) order must match the host-side weight-row permutation (k = pd + 2*ph).
    for k, (pd, ph) in enumerate(((0, 0), (1, 0), (0, 1), (1, 1))):
        piece = x_ref[:, pd, :, ph, :, :].reshape(n, C2)       # (n, 2C), x dtype
        pf = piece.astype(jnp.float32)                          # f32 only for LN stats
        s1 = s1 + jnp.sum(pf, axis=-1, keepdims=True)
        s2 = s2 + jnp.sum(pf * pf, axis=-1, keepdims=True)
        acc = acc + jnp.dot(piece, w_ref[k * C2:(k + 1) * C2, :],
                            preferred_element_type=jnp.float32)

    mu = s1 * inv_feat
    var = s2 * inv_feat - mu * mu                  # one-pass variance
    inv = jax.lax.rsqrt(var + 1e-5)                # PyTorch LayerNorm eps
    colsum = aff_ref[0:1, :]
    bias = aff_ref[1:2, :]
    y = inv * (acc - mu * colsum) + bias           # folded-LN epilogue on (n, 2C)
    o_ref[...] = y.astype(o_ref.dtype)


# ----------------------------------------------------------------------------
# Host-side helpers
# ----------------------------------------------------------------------------
def _data_order_perm(C):
    """perm[q] = PyTorch-concat feature index matching the kernel's data order q."""
    n_of = {t: i for i, t in enumerate(_PT_ORDER)}
    perm = np.empty(8 * C, np.int32)
    for pd in (0, 1):
        for ph in (0, 1):
            k = pd + 2 * ph
            for pw in (0, 1):
                q0 = k * 2 * C + pw * C
                p0 = n_of[(pd, ph, pw)] * C
                perm[q0:q0 + C] = np.arange(p0, p0 + C)
    return perm


def _pick_num_slabs(S, rows_per_slab, row_target):
    """Largest divisor G of S with G*rows_per_slab <= row_target, 8-aligned rows,
    and >= 2 grid steps when S >= 2 (keeps both v7x TensorCores busy)."""
    cap = S if S < 2 else S // 2
    best = None
    for g in range(1, S + 1):
        if S % g:
            continue
        rows = g * rows_per_slab
        if g < S and rows % 8 != 0:         # keep store blocks sublane-aligned
            continue
        if g <= cap and rows <= row_target:
            best = g
    return best if best is not None else S  # single full-array step (always legal)


# ----------------------------------------------------------------------------
# Wrapper: full PatchMerging3D forward
# ----------------------------------------------------------------------------
def patch_merging_3d(x, params, *, input_resolution):
    B, L, C = x.shape
    D, H, W = input_resolution
    assert L == D * H * W, "Input feature has wrong size"
    C2, C8 = 2 * C, 8 * C
    dtype = x.dtype
    isz = jnp.dtype(dtype).itemsize

    x5 = x.reshape(B, D, H, W, C)
    if (D % 2) or (H % 2) or (W % 2):
        # matches F.pad(x, (0, 0, 0, W%2, 0, H%2, 0, D%2))
        x5 = jnp.pad(x5, ((0, 0), (0, D % 2), (0, H % 2), (0, W % 2), (0, 0)))
    Dp, Hp, Wp = x5.shape[1], x5.shape[2], x5.shape[3]
    D2, H2, W2 = Dp // 2, Hp // 2, Wp // 2
    S = B * D2
    rows_per_slab = H2 * W2
    R = S * rows_per_slab
    Lo = D2 * H2 * W2

    # Metadata-only reshape: (S, pd, H2, ph, W2, pw*C) -- no HBM round trip.
    x6 = x5.reshape(S, 2, H2, 2, W2, 2 * C)

    # Fold LayerNorm affine into the reduction weight, in the kernel's data order.
    perm = _data_order_perm(C)
    w_t = params["reduction_w"].astype(jnp.float32).T          # (8C, 2C)
    gamma = params["norm_w"].astype(jnp.float32)[perm]
    beta = params["norm_b"].astype(jnp.float32)[perm]
    w_d = w_t[perm, :]
    w_g = gamma[:, None] * w_d                                  # (8C, 2C)
    colsum = jnp.sum(w_g, axis=0)
    bias = beta @ w_d
    aff = jnp.stack([colsum, bias]).astype(jnp.float32)         # (2, 2C)
    w_g = w_g.astype(dtype)

    # Row-tile selection: ~10 MiB of double-buffered in+out per step
    # (~2048 rows for f32 / ~4096 for bf16 at C=64), >=2 parallel steps if possible.
    # TODO(synk): if a single (H/2*W/2) slab ever exceeds the VMEM budget, also
    # tile the H/2 axis with a second grid dimension.
    row_target = max(rows_per_slab, (10 << 20) // (20 * C * isz))
    G = _pick_num_slabs(S, rows_per_slab, row_target)
    rows_blk = G * rows_per_slab
    grid = (S // G,)

    cost = pl.CostEstimate(
        flops=2 * R * C8 * C2,
        transcendentals=0,
        bytes_accessed=(R * C8 + R * C2 + C8 * C2) * isz + 2 * C2 * 4,
    )

    out = pl.pallas_call(
        _patch_merge_kernel,
        out_shape=jax.ShapeDtypeStruct((R, C2), dtype),
        grid=grid,
        in_specs=[
            pl.BlockSpec((G, 2, H2, 2, W2, 2 * C), lambda i: (i, 0, 0, 0, 0, 0)),
            pl.BlockSpec((C8, C2), lambda i: (0, 0)),
            pl.BlockSpec((2, C2), lambda i: (0, 0)),
        ],
        out_specs=pl.BlockSpec((rows_blk, C2), lambda i: (i, 0)),
        compiler_params=pltpu.CompilerParams(
            dimension_semantics=("parallel",),
            vmem_limit_bytes=24 << 20,     # modest cap; v7x only has 64 MiB physical
        ),
        cost_estimate=cost,
    )(x6, w_g, aff)

    return out.reshape(B, Lo, C2)


# ----------------------------------------------------------------------------
# Pure-JAX reference: exact mirror of the PyTorch module (independent of the
# kernel's data path, so it cross-checks the gather order + weight permutation).
# ----------------------------------------------------------------------------
def patch_merging_3d_ref(x, params, *, input_resolution):
    B, L, C = x.shape
    D, H, W = input_resolution
    x5 = x.reshape(B, D, H, W, C)
    x5 = jnp.pad(x5, ((0, 0), (0, D % 2), (0, H % 2), (0, W % 2), (0, 0)))
    x0 = x5[:, 0::2, 0::2, 0::2, :]
    x1 = x5[:, 1::2, 0::2, 0::2, :]
    x2 = x5[:, 0::2, 1::2, 0::2, :]
    x3 = x5[:, 0::2, 0::2, 1::2, :]
    x4 = x5[:, 1::2, 1::2, 0::2, :]
    x5_ = x5[:, 1::2, 0::2, 1::2, :]
    x6 = x5[:, 0::2, 1::2, 1::2, :]
    x7 = x5[:, 1::2, 1::2, 1::2, :]
    xm = jnp.concatenate([x0, x1, x2, x3, x4, x5_, x6, x7], -1)
    xm = xm.reshape(B, -1, 8 * C).astype(jnp.float32)
    mu = xm.mean(-1, keepdims=True)
    var = ((xm - mu) ** 2).mean(-1, keepdims=True)
    xn = (xm - mu) / jnp.sqrt(var + 1e-5) * params["norm_w"] + params["norm_b"]
    return xn @ params["reduction_w"].T            # Linear(8C -> 2C), bias=False


# ----------------------------------------------------------------------------
# Deterministic parameter init + demo
# ----------------------------------------------------------------------------
def init_params(key, dim):
    (k0,) = jax.random.split(key, 1)
    s = 0.05
    return {
        "norm_w": jnp.ones((8 * dim,), jnp.float32),
        "norm_b": jnp.zeros((8 * dim,), jnp.float32),
        "reduction_w": s * jax.random.normal(k0, (2 * dim, 8 * dim), jnp.float32),
    }


if __name__ == "__main__":
    dim = 64                             # 8C = 512, 2C = 128 (lane-dense output)
    input_resolution = (3, 8, 8)         # odd D exercises the padding path
    B = 2
    D, H, W = input_resolution
    L = D * H * W

    key = jax.random.PRNGKey(0)
    kx, kp = jax.random.split(key)
    x = jax.random.normal(kx, (B, L, dim), jnp.float32)
    params = init_params(kp, dim)

    out = patch_merging_3d(x, params, input_resolution=input_resolution)
    out = jax.block_until_ready(out)

    ref = jax.block_until_ready(
        patch_merging_3d_ref(x, params, input_resolution=input_resolution))

    Lo = ((D + D % 2) // 2) * ((H + H % 2) // 2) * ((W + W % 2) // 2)
    assert out.shape == (B, Lo, 2 * dim), out.shape
    assert jnp.allclose(out, ref.astype(out.dtype), rtol=1e-4, atol=1e-4), \
        f"max abs err {jnp.max(jnp.abs(out - ref))}"
    print("KERNEL_OK")
</pallas_src>

<mosaic_0001>
module attributes {stable_mosaic.version = 11 : i64} {
  func.func @_patch_merge_kernel(%arg0: i32, %arg1: memref<2x2x4x2x4x128xf32, #tpu.memory_space<vmem>>, %arg2: memref<512x128xf32, #tpu.memory_space<vmem>>, %arg3: memref<2x128xf32, #tpu.memory_space<vmem>>, %arg4: memref<32x128xf32, #tpu.memory_space<vmem>>) attributes {dimension_semantics = [#tpu.dimension_semantics<parallel>], iteration_bounds = array<i64: 2>, scalar_prefetch = 0 : i64, scratch_operands = 0 : i64, tpu.core_type = #tpu.core_type<tc>, window_params = [{transform_indices = @transform_0, window_bounds = array<i64: 2, 2, 4, 2, 4, 128>}, {pipeline_mode = #tpu.pipeline_mode<synchronous>, transform_indices = @transform_1, window_bounds = array<i64: 512, 128>}, {pipeline_mode = #tpu.pipeline_mode<synchronous>, transform_indices = @transform_2, window_bounds = array<i64: 2, 128>}, {transform_indices = @transform_3, window_bounds = array<i64: 32, 128>}]} {
    %cst = arith.constant 0.000000e+00 : f32
    %0 = vector.broadcast %cst : f32 to vector<32x128xf32>
    %cst_0 = arith.constant 0.000000e+00 : f32
    %1 = vector.broadcast %cst_0 : f32 to vector<32x1xf32>
    %cst_1 = arith.constant 0.000000e+00 : f32
    %2 = vector.broadcast %cst_1 : f32 to vector<32x1xf32>
    %c0 = arith.constant 0 : index
    %c0_2 = arith.constant 0 : index
    %c0_3 = arith.constant 0 : index
    %c0_4 = arith.constant 0 : index
    %c0_5 = arith.constant 0 : index
    %c0_6 = arith.constant 0 : index
    %3 = vector.load %arg1[%c0, %c0_2, %c0_3, %c0_4, %c0_5, %c0_6] : memref<2x2x4x2x4x128xf32, #tpu.memory_space<vmem>>, vector<2x1x4x1x4x128xf32>
    %4 = vector.shape_cast %3 : vector<2x1x4x1x4x128xf32> to vector<2x4x4x128xf32>
    %5 = vector.shape_cast %4 : vector<2x4x4x128xf32> to vector<32x128xf32>
    %cst_7 = arith.constant dense<0.000000e+00> : vector<32xf32>
    %6 = vector.multi_reduction <add>, %5, %cst_7 [1] : vector<32x128xf32> to vector<32xf32>
    %7 = vector.shape_cast %6 : vector<32xf32> to vector<32x1xf32>
    %8 = arith.addf %1, %7 : vector<32x1xf32>
    %9 = arith.mulf %5, %5 : vector<32x128xf32>
    %cst_8 = arith.constant dense<0.000000e+00> : vector<32xf32>
    %10 = vector.multi_reduction <add>, %9, %cst_8 [1] : vector<32x128xf32> to vector<32xf32>
    %11 = vector.shape_cast %10 : vector<32xf32> to vector<32x1xf32>
    %12 = arith.addf %2, %11 : vector<32x1xf32>
    %c0_9 = arith.constant 0 : index
    %c0_10 = arith.constant 0 : index
    %13 = vector.load %arg2[%c0_9, %c0_10] : memref<512x128xf32, #tpu.memory_space<vmem>>, vector<128x128xf32>
    %cst_11 = arith.constant dense<0.000000e+00> : vector<32x128xf32>
    %14 = tpu.matmul %5, %13, %cst_11 {dimension_numbers = #tpu.dot_dimension_numbers<[1], [0], [0], [1], [0, 0, 1, 1], [], []>} : vector<32x128xf32>, vector<128x128xf32>, vector<32x128xf32> -> vector<32x128xf32>
    %15 = arith.addf %0, %14 : vector<32x128xf32>
    %c0_12 = arith.constant 0 : index
    %c1 = arith.constant 1 : index
    %c0_13 = arith.constant 0 : index
    %c0_14 = arith.constant 0 : index
    %c0_15 = arith.constant 0 : index
    %c0_16 = arith.constant 0 : index
    %16 = vector.load %arg1[%c0_12, %c1, %c0_13, %c0_14, %c0_15, %c0_16] : memref<2x2x4x2x4x128xf32, #tpu.memory_space<vmem>>, vector<2x1x4x1x4x128xf32>
    %17 = vector.shape_cast %16 : vector<2x1x4x1x4x128xf32> to vector<2x4x4x128xf32>
    %18 = vector.shape_cast %17 : vector<2x4x4x128xf32> to vector<32x128xf32>
    %cst_17 = arith.constant dense<0.000000e+00> : vector<32xf32>
    %19 = vector.multi_reduction <add>, %18, %cst_17 [1] : vector<32x128xf32> to vector<32xf32>
    %20 = vector.shape_cast %19 : vector<32xf32> to vector<32x1xf32>
    %21 = arith.addf %8, %20 : vector<32x1xf32>
    %22 = arith.mulf %18, %18 : vector<32x128xf32>
    %cst_18 = arith.constant dense<0.000000e+00> : vector<32xf32>
    %23 = vector.multi_reduction <add>, %22, %cst_18 [1] : vector<32x128xf32> to vector<32xf32>
    %24 = vector.shape_cast %23 : vector<32xf32> to vector<32x1xf32>
    %25 = arith.addf %12, %24 : vector<32x1xf32>
    %c128 = arith.constant 128 : index
    %c0_19 = arith.constant 0 : index
    %26 = vector.load %arg2[%c128, %c0_19] : memref<512x128xf32, #tpu.memory_space<vmem>>, vector<128x128xf32>
    %cst_20 = arith.constant dense<0.000000e+00> : vector<32x128xf32>
    %27 = tpu.matmul %18, %26, %cst_20 {dimension_numbers = #tpu.dot_dimension_numbers<[1], [0], [0], [1], [0, 0, 1, 1], [], []>} : vector<32x128xf32>, vector<128x128xf32>, vector<32x128xf32> -> vector<32x128xf32>
    %28 = arith.addf %15, %27 : vector<32x128xf32>
    %c0_21 = arith.constant 0 : index
    %c0_22 = arith.constant 0 : index
    %c0_23 = arith.constant 0 : index
    %c1_24 = arith.constant 1 : index
    %c0_25 = arith.constant 0 : index
    %c0_26 = arith.constant 0 : index
    %29 = vector.load %arg1[%c0_21, %c0_22, %c0_23, %c1_24, %c0_25, %c0_26] : memref<2x2x4x2x4x128xf32, #tpu.memory_space<vmem>>, vector<2x1x4x1x4x128xf32>
    %30 = vector.shape_cast %29 : vector<2x1x4x1x4x128xf32> to vector<2x4x4x128xf32>
    %31 = vector.shape_cast %30 : vector<2x4x4x128xf32> to vector<32x128xf32>
    %cst_27 = arith.constant dense<0.000000e+00> : vector<32xf32>
    %32 = vector.multi_reduction <add>, %31, %cst_27 [1] : vector<32x128xf32> to vector<32xf32>
    %33 = vector.shape_cast %32 : vector<32xf32> to vector<32x1xf32>
    %34 = arith.addf %21, %33 : vector<32x1xf32>
    %35 = arith.mulf %31, %31 : vector<32x128xf32>
    %cst_28 = arith.constant dense<0.000000e+00> : vector<32xf32>
    %36 = vector.multi_reduction <add>, %35, %cst_28 [1] : vector<32x128xf32> to vector<32xf32>
    %37 = vector.shape_cast %36 : vector<32xf32> to vector<32x1xf32>
    %38 = arith.addf %25, %37 : vector<32x1xf32>
    %c256 = arith.constant 256 : index
    %c0_29 = arith.constant 0 : index
    %39 = vector.load %arg2[%c256, %c0_29] : memref<512x128xf32, #tpu.memory_space<vmem>>, vector<128x128xf32>
    %cst_30 = arith.constant dense<0.000000e+00> : vector<32x128xf32>
    %40 = tpu.matmul %31, %39, %cst_30 {dimension_numbers = #tpu.dot_dimension_numbers<[1], [0], [0], [1], [0, 0, 1, 1], [], []>} : vector<32x128xf32>, vector<128x128xf32>, vector<32x128xf32> -> vector<32x128xf32>
    %41 = arith.addf %28, %40 : vector<32x128xf32>
    %c0_31 = arith.constant 0 : index
    %c1_32 = arith.constant 1 : index
    %c0_33 = arith.constant 0 : index
    %c1_34 = arith.constant 1 : index
    %c0_35 = arith.constant 0 : index
    %c0_36 = arith.constant 0 : index
    %42 = vector.load %arg1[%c0_31, %c1_32, %c0_33, %c1_34, %c0_35, %c0_36] : memref<2x2x4x2x4x128xf32, #tpu.memory_space<vmem>>, vector<2x1x4x1x4x128xf32>
    %43 = vector.shape_cast %42 : vector<2x1x4x1x4x128xf32> to vector<2x4x4x128xf32>
    %44 = vector.shape_cast %43 : vector<2x4x4x128xf32> to vector<32x128xf32>
    %cst_37 = arith.constant dense<0.000000e+00> : vector<32xf32>
    %45 = vector.multi_reduction <add>, %44, %cst_37 [1] : vector<32x128xf32> to vector<32xf32>
    %46 = vector.shape_cast %45 : vector<32xf32> to vector<32x1xf32>
    %47 = arith.addf %34, %46 : vector<32x1xf32>
    %48 = arith.mulf %44, %44 : vector<32x128xf32>
    %cst_38 = arith.constant dense<0.000000e+00> : vector<32xf32>
    %49 = vector.multi_reduction <add>, %48, %cst_38 [1] : vector<32x128xf32> to vector<32xf32>
    %50 = vector.shape_cast %49 : vector<32xf32> to vector<32x1xf32>
    %51 = arith.addf %38, %50 : vector<32x1xf32>
    %c384 = arith.constant 384 : index
    %c0_39 = arith.constant 0 : index
    %52 = vector.load %arg2[%c384, %c0_39] : memref<512x128xf32, #tpu.memory_space<vmem>>, vector<128x128xf32>
    %cst_40 = arith.constant dense<0.000000e+00> : vector<32x128xf32>
    %53 = tpu.matmul %44, %52, %cst_40 {dimension_numbers = #tpu.dot_dimension_numbers<[1], [0], [0], [1], [0, 0, 1, 1], [], []>} : vector<32x128xf32>, vector<128x128xf32>, vector<32x128xf32> -> vector<32x128xf32>
    %54 = arith.addf %41, %53 : vector<32x128xf32>
    %cst_41 = arith.constant 0.001953125 : f32
    %55 = vector.broadcast %cst_41 : f32 to vector<32x1xf32>
    %56 = arith.mulf %47, %55 : vector<32x1xf32>
    %cst_42 = arith.constant 0.001953125 : f32
    %57 = vector.broadcast %cst_42 : f32 to vector<32x1xf32>
    %58 = arith.mulf %51, %57 : vector<32x1xf32>
    %59 = arith.mulf %56, %56 : vector<32x1xf32>
    %60 = arith.subf %58, %59 : vector<32x1xf32>
    %cst_43 = arith.constant 9.99999974E-6 : f32
    %61 = vector.broadcast %cst_43 : f32 to vector<32x1xf32>
    %62 = arith.addf %60, %61 : vector<32x1xf32>
    %63 = math.rsqrt %62 : vector<32x1xf32>
    %c0_44 = arith.constant 0 : index
    %c0_45 = arith.constant 0 : index
    %64 = vector.load %arg3[%c0_44, %c0_45] : memref<2x128xf32, #tpu.memory_space<vmem>>, vector<1x128xf32>
    %c1_46 = arith.constant 1 : index
    %c0_47 = arith.constant 0 : index
    %65 = vector.load %arg3[%c1_46, %c0_47] : memref<2x128xf32, #tpu.memory_space<vmem>>, vector<1x128xf32>
    %66 = vector.broadcast %56 : vector<32x1xf32> to vector<32x128xf32>
    %67 = vector.broadcast %64 : vector<1x128xf32> to vector<32x128xf32>
    %68 = arith.mulf %66, %67 : vector<32x128xf32>
    %69 = arith.subf %54, %68 : vector<32x128xf32>
    %70 = vector.broadcast %63 : vector<32x1xf32> to vector<32x128xf32>
    %71 = arith.mulf %70, %69 : vector<32x128xf32>
    %72 = vector.broadcast %65 : vector<1x128xf32> to vector<32x128xf32>
    %73 = arith.addf %71, %72 : vector<32x128xf32>
    %c0_48 = arith.constant 0 : index
    %c0_49 = arith.constant 0 : index
    %74 = vector.load %arg4[%c0_48, %c0_49] : memref<32x128xf32, #tpu.memory_space<vmem>>, vector<32x128xf32>
    tpu.vector_store %arg4[%c0_48, %c0_49], %73 {strides = array<i32>} : memref<32x128xf32, #tpu.memory_space<vmem>>, vector<32x128xf32>,
    return
  }
  func.func @transform_0(%arg0: i32) -> (i32, i32, i32, i32, i32, i32) {
    %c0_i32 = arith.constant 0 : i32
    %c0_i32_0 = arith.constant 0 : i32
    %c0_i32_1 = arith.constant 0 : i32
    %c0_i32_2 = arith.constant 0 : i32
    %c0_i32_3 = arith.constant 0 : i32
    %c0_i32_4 = arith.constant 0 : i32
    return %arg0, %c0_i32, %c0_i32_0, %c0_i32_1, %c0_i32_2, %c0_i32_3 : i32, i32, i32, i32, i32, i32
  }
  func.func @transform_1(%arg0: i32) -> (i32, i32) {
    %c0_i32 = arith.constant 0 : i32
    %c0_i32_0 = arith.constant 0 : i32
    %c0_i32_1 = arith.constant 0 : i32
    return %c0_i32, %c0_i32_0 : i32, i32
  }
  func.func @transform_2(%arg0: i32) -> (i32, i32) {
    %c0_i32 = arith.constant 0 : i32
    %c0_i32_0 = arith.constant 0 : i32
    %c0_i32_1 = arith.constant 0 : i32
    return %c0_i32, %c0_i32_0 : i32, i32
  }
  func.func @transform_3(%arg0: i32) -> (i32, i32) {
    %c0_i32 = arith.constant 0 : i32
    %c0_i32_0 = arith.constant 0 : i32
    return %arg0, %c0_i32 : i32, i32
  }
}

</mosaic_0001>

<bundles_post_ra>
// kernel: tpu_custom_call.1
= control target key start
LH: loop header
LB: loop body
LE: loop exit
PB: predicated region body
PF: predicated region fallthrough
CT: control target
= control target key end

     0   :  { %8 = vsyncpa [#allocation3], 0  ;;  %s2069_s0 = inlined_call_operand.hbm [shape: f32[4,2,4,2,4,128], index: 0, kind: input, shape index: {}]   ;;  %s2070_s1 = inlined_call_operand.hbm [shape: f32[512,128], index: 1, kind: input, shape index: {}]   ;;  %s2071_s2 = inlined_call_operand.vmem [shape: f32[2,128], index: 2, kind: input, shape index: {}]   ;;  %s2072_s3 = inlined_call_operand.hbm [shape: f32[64,128], index: 3, kind: output, shape index: {}]  }
   0x1   :  { %10 = vsyncpa [#allocation3 + $0x1], 0 }
   0x2   :  { %11 = vsyncpa [#allocation6], 0 }
   0x3   :  { %12 = vsyncpa [#allocation4], 0 }
   0x4   :  { %14 = vsyncpa [#allocation4 + $0x1], 0  ;;  %s1725_s12 = smov 0   ;;  %s1727_s13 = smov 0  }
   0x5   :  { %s1729_s14 = smov 0   ;;  %s1731_s15 = smov 0  }
   0x6 LB: > { %s1746_s16 = sadd.s32 4294967295, %s1694_s15   ;;  %s1061_s17 = sadd.s32 4294967294, %s1694_s15   ;;  %s1694_s15 = sphi %s1731_s15, %s2092_s15   ;;  %s1690_s14 = sphi %s1729_s14, %s2091_s14   ;;  %s1686_s13 = sphi %s1727_s13, %s2090_s13   ;;  %s1682_s12 = sphi %s1725_s12, %s2089_s12  }
   0x7   : > { %p40_p0 = scmp.ne.s32.totalorder %s1686_s13, %s1682_s12  ;;  %p2073_p1 = scmp.eq.s32.totalorder %s1746_s16, 0 }
   0x8   : > { %p112_p3 = scmp.eq.s32.totalorder %s1061_s17, 1  ;;  %p1062_p5 = scmp.ge.s32.totalorder %s1694_s15, 1 }
   0x9   : > { %p1755_p4 = por %p2073_p1, %p40_p0  ;;  %p119_p7 = scmp.lt.s32.totalorder %s1694_s15, 3 }
   0xa   : > { %p1760_p6 = por %p112_p3, %p40_p0  ;;  %s1696_s21 = smov [#allocation5]  }
   0xb   : > { %s2076_s18 = scalar_select %p1755_p4, 1, 0 }
   0xc   : > { %s2077_s19 = scalar_select %p1760_p6, 1, 0 }
   0xd   : > { %p1765_p8 = pnand %p1062_p5, %p119_p7  ;;  %s131_s22 = sshll.u32 %s1696_s21, 4  ;;  %s1769_s22 = int_to_ptr.vmem [resolvable:$true] %s131_s22 }
   0xe   : > { %s1781_s24 = sadd.s32 1, %s1694_s15   ;;  %s27_s25 = sadd.s32 1, %s1690_s14 }
   0xf   : > { %s2078_s20 = scalar_select %p1765_p8, 1, 0 }
  0x10   : > { %p1487_p9 = pneg %p1765_p8  ;;  %s24_s26 = ssub.s32 %s1694_s15, %s1781_s24 }
  0x11   : > { %s1566_s29 = scalar_lea.hbm %s2070_s1, 8192 }
  0x12   : > { %p1776_p11 = pnand %p1487_p9, %p2073_p1  ;;  %p1567_p12 = scmp.ne.s32.totalorder %s2070_s1, %s1566_s29 }
  0x13   : > { %p1573_p5 = scmp.lt.u32.totalorder %s1566_s29, %s2070_s1 }
  0x14   : > { %p1568_p13 = pneg %p1776_p11 }
  0x16   : > { %p1569_p0 = pnand %p1568_p13, %p1567_p12 }
  0x18   : > { %p1570_p3 = pneg %p1569_p0 }
  0x1a   : > { %p1575_p7 = pnand %p1573_p5, %p1570_p3 }
  0x1c   : > { %1578 = shalt.err (!%p1575_p7)
}
  0x1d   : > { %s1579_s7 = scalar_lea.vmem %s1769_s22, 8192  ;;  %p1587_p2 = scmp.lt.s32.totalorder %s1769_s22, %s1769_s22 }
  0x1e   : > { %p1580_p9 = scmp.ne.s32.totalorder %s1769_s22, %s1579_s7  ;;  %p1588_p6 = scmp.lt.s32.totalorder %s1579_s7, %s1579_s7 }
  0x20   : > { %p1582_p10 = pnand %p1580_p9, %p1568_p13  ;;  %p1589_p4 = por %p1588_p6, %p1587_p2 }
  0x22   : > { %p1583_p1 = pneg %p1582_p10 }
  0x24   : > { %p1590_p8 = pnand %p1589_p4, %p1583_p1 }
  0x26   : > { %1593 = shalt.err (!%p1590_p8)
}
  0x27   : > { %s1697_s8 = smov 128   ;;  %s1698_s9 = smov 8  }
  0x28   : > { %1490 = dma.hbm_to_vmem [thread:$0]  (!%p1776_p11), %s2070_s1, 8192, %s1769_s22, [#allocation6], %s1697_s8, %s1697_s8, %s1698_s9  }
  0x29   : > { %p25_p2 = scmp.eq.s32.totalorder %s24_s26, 0  ;;  %p34_p1 = scmp.ne.s32.totalorder %s1690_s14, %s1686_s13 }
  0x2a   : > { %p35_p4 = scmp.eq.s32.totalorder %s1694_s15, 0  ;;  %p1500_p6 = scmp.lt.s32.totalorder %s1694_s15, 2 }
  0x2b   : > { %s1812_s17 = scalar_select %p25_p2, %s1690_s14, %s27_s25  }
  0x2c   : > { %p36_p8 = por %p35_p4, %p34_p1  ;;  %p2080_p10 = scmp.eq.s32.totalorder %s1746_s16, 1 }
  0x2d   : > { %s148_s27 = sand.u32 1, %s1690_s14   ;;  %s1105_s28 = sshll.u32 %s1694_s15, 11 }
  0x2e   : > { %p1816_p12 = por %p2080_p10, %p34_p1  ;;  %s1065_s29 = sshll.u32 %s148_s27, 7 }
  0x2f   : > { %s1825_s4 = scalar_lea.hbm %s2069_s0, %s1105_s28  ;;  %s152_s22 = scalar_lea.vmem [#allocation2], %s1065_s29 }
  0x30   : > { %s160_s25 = sshll.u32 %s152_s22, 4  ;;  %p1827_p11 = pnand %p1500_p6, %p36_p8  ;;  %s1831_s25 = int_to_ptr.vmem [resolvable:$true] %s160_s25 }
  0x31   : > { %s1833_s5 = scalar_lea.sflag [#allocation3], %s148_s27  ;;  %s1594_s6 = scalar_lea.hbm %s1825_s4, 2048 }
  0x32   : > { %p1595_p13 = scmp.ne.s32.totalorder %s1825_s4, %s1594_s6  ;;  %p1596_p0 = pneg %p1827_p11 }
  0x33   : > { %s1599_s9 = scalar_lea.hbm %s2069_s0, 4096  ;;  %p1600_p7 = scmp.lt.u32.totalorder %s1825_s4, %s2069_s0 }
  0x34   : > { %p1597_p3 = pnand %p1596_p0, %p1595_p13  ;;  %p1601_p9 = scmp.lt.u32.totalorder %s1599_s9, %s1594_s6 }
  0x35   : > { %p1603_p1 = scmp.lt.u32.totalorder %s1594_s6, %s1825_s4 }
  0x36   : > { %p1598_p5 = pneg %p1597_p3  ;;  %p1602_p2 = por %p1601_p9, %p1600_p7 }
  0x38   : > { %p1604_p4 = por %p1603_p1, %p1602_p2 }
  0x3a   : > { %p1605_p6 = pnand %p1604_p4, %p1598_p5 }
  0x3c   : > { %1608 = shalt.err (!%p1605_p6)
}
  0x3d   : > { %s1609_s27 = scalar_lea.vmem %s1831_s25, 2048  ;;  %s1699_s28 = smov [#allocation2]  }
  0x3e   : > { %p1610_p8 = scmp.ne.s32.totalorder %s1831_s25, %s1609_s27  ;;  %s1614_s29 = sshll.u32 %s1699_s28, 4  ;;  %s1615_s29 = int_to_ptr.vmem [resolvable:$false] %s1614_s29 }
  0x3f   : > { %s1616_s23 = scalar_lea.vmem %s1615_s29, 4096  ;;  %p1617_p3 = scmp.lt.s32.totalorder %s1831_s25, %s1615_s29 }
  0x40   : > { %p1612_p10 = pnand %p1610_p8, %p1596_p0  ;;  %p1618_p7 = scmp.lt.s32.totalorder %s1616_s23, %s1609_s27 }
  0x42   : > { %p1613_p13 = pneg %p1612_p10  ;;  %p1619_p9 = por %p1618_p7, %p1617_p3 }
  0x44   : > { %p1620_p2 = pnand %p1619_p9, %p1613_p13 }
  0x46   : > { %1623 = shalt.err (!%p1620_p2)
}
  0x47   : > { %s1700_s30 = smov 64   ;;  %s1701_s22 = smov 4  }
  0x48   : > { %1494 = dma.hbm_to_vmem [thread:$0]  (!%p1827_p11), %s1825_s4, 2048, %s1831_s25, %s1833_s5, %s1700_s30, %s1700_s30, %s1701_s22  }
  0x49   : > { %p2083_p0 = scmp.ne.s32.totalorder %s2078_s20, 0 }
  0x4a   : > { %s1864_s6 = sand.u32 (!%p2083_p0), 1, %s1686_s13   ;;  %p2084_p5 = scmp.ne.s32.totalorder (!%p2083_p0), %s2076_s18, 0 }
  0x4b   : > { %172 = sbr.rel (%p2083_p0) target bundleno = 395 (0x18b), region = 32  ;;  %s1070_s7 = sshll.u32 (!%p2083_p0), %s1864_s6, 7 }
  0x4c   : > { %s175_s8 = scalar_lea.sflag (!%p2083_p0), [#allocation3], %s1864_s6  ;;  %s1868_s9 = scalar_lea.vmem (!%p2083_p0), [#allocation2], %s1070_s7 }
  0x52   : > { %1669 = dma.done.wait (%p2084_p5), %s175_s8, 2048  }
  0x53   : > { %1671 = vsyncadd (%p2084_p5), %s175_s8, 4294965248  ;;  %p2085_p11 = scmp.eq.s32.totalorder %s1746_s16, 0 }
  0x55   : > { %1673 = dma.done.wait (%p2085_p11), [#allocation6], 8192   ;;  %p2086_p1 = pmov %p2085_p11 }
  0x56   : > { %v368_v0 = vld [vmem:[#allocation5 + $0x80] sm:$0xff]  ;;  %v369_v1 = vld [vmem:[#allocation5 + $0x88] sm:$0xff]  ;;  %v370_v5 = vld [vmem:[#allocation5 + $0x90] sm:$0xff]  ;;  %s1072_s4 = sshll.u32 %s1864_s6, 5  ;;  %s1106_s11 = sshll.u32 %s1746_s16, 9 }
  0x57   : > { %1675 = vsyncadd (%p2086_p1), [#allocation6], 4294959104  ;;  %v627_v2 = vld [vmem:[#allocation5 + $0x100] sm:$0xff]  ;;  %v1339_v3 = vpack.c.bf16 %v369_v1, %v368_v0  ;;  %v628_v4 = vld [vmem:[#allocation5 + $0x108] sm:$0xff]  ;;  %s204_s5 = scalar_lea.vmem [#allocation7], %s1072_s4  ;;  %s2025_s29 = scalar_lea.hbm %s2072_s3, %s1106_s11 }
  0x58   : > { %v371_v6 = vld [vmem:[#allocation5 + $0x98] sm:$0xff]  ;;  %v1403_v7 = vpack.c.bf16 %v628_v4, %v627_v2  ;;  %v629_v9 = vld [vmem:[#allocation5 + $0x110] sm:$0xff]  ;;  %v372_v11 = vld [vmem:[#allocation5 + $0xa0] sm:$0xff]  ;;  %s978_s10 = sshll.u32 %s204_s5, 4  ;;  %s965_s16 = scalar_lea.sflag [#allocation4], %s1864_s6  ;;  %s2020_s10 = int_to_ptr.vmem [resolvable:$true] %s978_s10 }
  0x59   : > { %v1343_v8 = vpack.c.bf16 %v371_v6, %v370_v5  ;;  %v630_v10 = vld [vmem:[#allocation5 + $0x118] sm:$0xff]  ;;  %1340 = vmatprep.subr.bf16.mxu1 %v1339_v3  ;;  %v373_v13 = vld [vmem:[#allocation5 + $0xa8] sm:$0xff]  ;;  %v631_v14 = vld [vmem:[#allocation5 + $0x120] sm:$0xff]  ;;  %s1624_s23 = scalar_lea.vmem %s2020_s10, 512  ;;  %s1702_s30 = smov [#allocation7]  }
  0x5a   : > { %v1407_v12 = vpack.c.bf16 %v630_v10, %v629_v9  ;;  %v632_v15 = vld [vmem:[#allocation5 + $0x128] sm:$0xff]  ;;  %1404 = vmatprep.subr.bf16.mxu0 %v1403_v7  ;;  %1342 = vmatpush3.bf16.msra.mxu1 %v1339_v3  ;;  %v207_v16 = vld [vmem:[%s1868_s9] sm:$0xf]  ;;  %v1347_v18 = vpack.c.bf16 %v373_v13, %v372_v11  ;;  %v374_v20 = vld [vmem:[#allocation5 + $0xb0] sm:$0xff]  ;;  %p1625_p4 = scmp.ne.s32.totalorder %s2020_s10, %s1624_s23  ;;  %s1628_s22 = sshll.u32 %s1702_s30, 4  ;;  %s1629_s22 = int_to_ptr.vmem [resolvable:$false] %s1628_s22 }
  0x5b   : > { %v208_v17 = vld [vmem:[%s1868_s9 + $0x8] sm:$0xf]  ;;  %1406 = vmatpush3.bf16.msra.mxu0 %v1403_v7  ;;  %1344 = vmatprep.subr.bf16.mxu1 %v1343_v8  ;;  %v375_v21 = vld [vmem:[#allocation5 + $0xb8] sm:$0xff]  ;;  %v1411_v22 = vpack.c.bf16 %v632_v15, %v631_v14  ;;  %v1883_v23 = vld [vmem:[%s1868_s9 + $0x40] sm:$0xf]  ;;  %v243_v57 = vmul.f32 %v207_v16, %v207_v16  ;;  %s1630_s7 = scalar_lea.vmem %s1629_s22, 1024  ;;  %p1631_p10 = scmp.lt.s32.totalorder %s2020_s10, %s1629_s22 }
  0x5c   : > { %v1880_v19 = vcombine.low %v207_v16, %v208_v17  ;;  %1408 = vmatprep.subr.bf16.mxu0 %v1407_v12  ;;  %v1886_v24 = vld [vmem:[%s1868_s9 + $0x48] sm:$0xf]  ;;  %v209_v25 = vld [vmem:[%s1868_s9 + $0x10] sm:$0xf]  ;;  %v634_v27 = vld [vmem:[#allocation5 + $0x138] sm:$0xff]  ;;  %v1351_v32 = vpack.c.bf16 %v375_v21, %v374_v20  ;;  %v244_v58 = vmul.f32 %v208_v17, %v208_v17  ;;  %p1626_p6 = pnand %p1625_p4, %p1816_p12  ;;  %p1632_p13 = scmp.lt.s32.totalorder %s1630_s7, %s1624_s23 }
  0x5d   : > { %v633_v26 = vld [vmem:[#allocation5 + $0x130] sm:$0xff]  ;;  %v1892_v28 = vcombine.low %v1883_v23, %v1886_v24  ;;  %v210_v29 = vld [vmem:[%s1868_s9 + $0x18] sm:$0xf]  ;;  %v1904_v34 = vld [vmem:[%s1868_s9 + $0x20] sm:$0xf]  ;;  %v245_v61 = vmul.f32 %v209_v25, %v209_v25  ;;  %v248_v9 = vmul.f32 %v1886_v24, %v1886_v24 }
  0x5e   : > { %231 = vadd.xlane.f32.xlu0 %v1880_v19  ;;  %1346 = vmatpush3.bf16.msra.mxu1 %v1343_v8  ;;  %v1895_v30 = vcombine.low %v209_v25, %v210_v29  ;;  %v1898_v31 = vld [vmem:[%s1868_s9 + $0x50] sm:$0xf]  ;;  %v1901_v33 = vld [vmem:[%s1868_s9 + $0x58] sm:$0xf]  ;;  %v1907_v35 = vld [vmem:[%s1868_s9 + $0x28] sm:$0xf]  ;;  %v1415_v36 = vpack.c.bf16 %v634_v27, %v633_v26  ;;  %v246_v62 = vmul.f32 %v210_v29, %v210_v29  ;;  %p1627_p8 = pneg %p1626_p6  ;;  %p1633_p3 = por %p1632_p13, %p1631_p10 }
  0x5f   : > { %1410 = vmatpush3.bf16.msra.mxu0 %v1407_v12  ;;  %1348 = vmatprep.subr.bf16.mxu1 %v1347_v18  ;;  %v376_v37 = vld [vmem:[#allocation5 + $0xc0] sm:$0xff]  ;;  %v377_v38 = vld [vmem:[#allocation5 + $0xc8] sm:$0xff]  ;;  %v1912_v40 = vcombine.low %v1898_v31, %v1901_v33  ;;  %v312_v41 = vcombine.low %v1904_v34, %v1907_v35  ;;  %v1918_v43 = vld [vmem:[%s1868_s9 + $0x30] sm:$0xf]  ;;  %v259_v7 = vcombine.low %v243_v57, %v244_v58 }
  0x60   : > { %1412 = vmatprep.subr.bf16.mxu0 %v1411_v22  ;;  %235 = vadd.xlane.f32.xlu1 %v1892_v28  ;;  %v635_v39 = vld [vmem:[#allocation5 + $0x140] sm:$0xff]  ;;  %v636_v42 = vld [vmem:[#allocation5 + $0x148] sm:$0xff]  ;;  %v1921_v44 = vld [vmem:[%s1868_s9 + $0x38] sm:$0xf]  ;;  %v1355_v47 = vpack.c.bf16 %v377_v38, %v376_v37  ;;  %v247_v8 = vmul.f32 %v1883_v23, %v1883_v23  ;;  %v249_v11 = vmul.f32 %v1898_v31, %v1898_v31  ;;  %p1634_p7 = pnand %p1633_p3, %p1627_p8 }
  0x61   : > { %v1924_v45 = vld [vmem:[%s1868_s9 + $0x60] sm:$0xf]  ;;  %v1927_v46 = vld [vmem:[%s1868_s9 + $0x68] sm:$0xf]  ;;  %1219 = vmatprep.mubr.f32.mxu1 %v312_v41  ;;  %v1419_v48 = vpack.c.bf16 %v636_v42, %v635_v39  ;;  %v378_v49 = vld [vmem:[#allocation5 + $0xd0] sm:$0xff]  ;;  %v1932_v52 = vcombine.low %v1918_v43, %v1921_v44  ;;  %v250_v12 = vmul.f32 %v1901_v33, %v1901_v33  ;;  %v260_v16 = vcombine.low %v245_v61, %v246_v62 }
  0x62   : > { %233 = vadd.xlane.f32.xlu0 %v1895_v30  ;;  %1350 = vmatpush3.bf16.msra.mxu1 %v1347_v18  ;;  %v379_v50 = vld [vmem:[#allocation5 + $0xd8] sm:$0xff]  ;;  %v637_v51 = vld [vmem:[#allocation5 + $0x150] sm:$0xff]  ;;  %v1936_v54 = vcombine.low %v1924_v45, %v1927_v46  ;;  %v1945_v59 = vld [vmem:[%s1868_s9 + $0x4] sm:$0xf]  ;;  %v261_v20 = vcombine.low %v247_v8, %v248_v9  ;;  %v332_v21 = vmul.f32 %v1904_v34, %v1904_v34 }
  0x63   : > { %1414 = vmatpush3.bf16.msra.mxu0 %v1411_v22  ;;  %1352 = vmatprep.subr.bf16.mxu1 %v1351_v32  ;;  %v638_v53 = vld [vmem:[#allocation5 + $0x158] sm:$0xff]  ;;  %v1939_v55 = vld [vmem:[%s1868_s9 + $0x70] sm:$0xf]  ;;  %v1359_v60 = vpack.c.bf16 %v379_v50, %v378_v49  ;;  %v1948_v63 = vld [vmem:[%s1868_s9 + $0xc] sm:$0xf]  ;;  %v333_v22 = vmul.f32 %v1907_v35, %v1907_v35  ;;  %v262_v24 = vcombine.low %v249_v11, %v250_v12 }
  0x64   : > { %1416 = vmatprep.subr.bf16.mxu0 %v1415_v36  ;;  %237 = vadd.xlane.f32.xlu1 %v1912_v40  ;;  %v1942_v56 = vld [vmem:[%s1868_s9 + $0x78] sm:$0xf]  ;;  %v1423_v0 = vpack.c.bf16 %v638_v53, %v637_v51  ;;  %v380_v1 = vld [vmem:[#allocation5 + $0xe0] sm:$0xff]  ;;  %v381_v2 = vld [vmem:[#allocation5 + $0xe8] sm:$0xff]  ;;  %v1957_v4 = vcombine.low %v1945_v59, %v1948_v63  ;;  %v334_v29 = vmul.f32 %v1918_v43, %v1918_v43 }
  0x65   : > { %v1953_v3 = vcombine.low %v1939_v55, %v1942_v56  ;;  %v639_v5 = vld [vmem:[#allocation5 + $0x160] sm:$0xff]  ;;  %v640_v6 = vld [vmem:[#allocation5 + $0x168] sm:$0xff]  ;;  %v1363_v10 = vpack.c.bf16 %v381_v2, %v380_v1  ;;  %v382_v14 = vld [vmem:[#allocation5 + $0xf0] sm:$0xff]  ;;  %v335_v31 = vmul.f32 %v1921_v44, %v1921_v44  ;;  %v348_v34 = vcombine.low %v332_v21, %v333_v22 }
  0x66   : > { %320 = vadd.xlane.f32.xlu0 %v312_v41  ;;  %1354 = vmatpush3.bf16.msra.mxu1 %v1351_v32  ;;  %v1427_v13 = vpack.c.bf16 %v640_v6, %v639_v5  ;;  %v383_v15 = vld [vmem:[#allocation5 + $0xf8] sm:$0xff]  ;;  %v641_v17 = vld [vmem:[#allocation5 + $0x170] sm:$0xff]  ;;  %v279_v26 = vld [vmem:[#allocation5] sm:$0xff]  ;;  %v336_v35 = vmul.f32 %v1924_v45, %v1924_v45  ;;  %v338_v41 = vmul.f32 %v1939_v55, %v1939_v55 }
  0x67   : > { %1418 = vmatpush3.bf16.msra.mxu0 %v1415_v36  ;;  %1356 = vmatprep.subr.bf16.mxu1 %v1355_v47  ;;  %v642_v18 = vld [vmem:[#allocation5 + $0x178] sm:$0xff]  ;;  %v1367_v23 = vpack.c.bf16 %v383_v15, %v382_v14  ;;  %v280_v27 = vld [vmem:[#allocation5 + $0x8] sm:$0xff]  ;;  %v805_v32 = vld [vmem:[#allocation5 + $0x180] sm:$0xff]  ;;  %v337_v36 = vmul.f32 %v1927_v46, %v1927_v46  ;;  %v339_v45 = vmul.f32 %v1942_v56, %v1942_v56 }
  0x68   : > { %1420 = vmatprep.subr.bf16.mxu0 %v1419_v48  ;;  %322 = vadd.xlane.f32.xlu1 %v1932_v52  ;;  %v1431_v25 = vpack.c.bf16 %v642_v18, %v641_v17  ;;  %v806_v33 = vld [vmem:[#allocation5 + $0x188] sm:$0xff]  ;;  %v1371_v37 = vpack.c.bf16 %v280_v27, %v279_v26  ;;  %v1083_v38 = vld [vmem:[%s1868_s9 + $0x14] sm:$0xf]  ;;  %v1084_v39 = vld [vmem:[%s1868_s9 + $0x1c] sm:$0xf]  ;;  %v592_v11 = vmul.f32 %v1948_v63, %v1948_v63 }
  0x69   : > { %1295 = vmatprep.mubr.f32.mxu0 %v1957_v4  ;;  %v1435_v42 = vpack.c.bf16 %v806_v33, %v805_v32  ;;  %v281_v43 = vld [vmem:[#allocation5 + $0x10] sm:$0xff]  ;;  %v282_v44 = vld [vmem:[#allocation5 + $0x18] sm:$0xff]  ;;  %v350_v49 = vcombine.low %v336_v35, %v337_v36  ;;  %v572_v50 = vcombine.low %v1083_v38, %v1084_v39  ;;  %v283_v55 = vld [vmem:[#allocation5 + $0x20] sm:$0xff]  ;;  %v594_v14 = vmul.f32 %v1084_v39, %v1084_v39 }
  0x6a   : > { %324 = vadd.xlane.f32.xlu0 %v1936_v54  ;;  %1358 = vmatpush3.bf16.msra.mxu1 %v1355_v47  ;;  %v349_v47 = vcombine.low %v334_v29, %v335_v31  ;;  %v807_v46 = vld [vmem:[#allocation5 + $0x190] sm:$0xff]  ;;  %v1375_v51 = vpack.c.bf16 %v282_v44, %v281_v43  ;;  %v284_v57 = vld [vmem:[#allocation5 + $0x28] sm:$0xff]  ;;  %v809_v58 = vld [vmem:[#allocation5 + $0x1a0] sm:$0xff] }
  0x6b   : > { %1422 = vmatpush3.bf16.msra.mxu0 %v1419_v48  ;;  %1360 = vmatprep.subr.bf16.mxu1 %v1359_v60  ;;  %v808_v48 = vld [vmem:[#allocation5 + $0x198] sm:$0xff]  ;;  %v810_v56 = vld [vmem:[#allocation5 + $0x1a8] sm:$0xff]  ;;  %v1085_v61 = vld [vmem:[%s1868_s9 + $0x44] sm:$0xf] }
  0x6c   : > { %1424 = vmatprep.subr.bf16.mxu0 %v1423_v0  ;;  %326 = vadd.xlane.f32.xlu1 %v1953_v3  ;;  %v1439_v53 = vpack.c.bf16 %v808_v48, %v807_v46  ;;  %v1086_v62 = vld [vmem:[%s1868_s9 + $0x4c] sm:$0xf]  ;;  %v1443_v1 = vpack.c.bf16 %v810_v56, %v809_v58  ;;  %v285_v2 = vld [vmem:[#allocation5 + $0x30] sm:$0xff]  ;;  %v286_v5 = vld [vmem:[#allocation5 + $0x38] sm:$0xff] }
  0x6d   : > { %v811_v6 = vld [vmem:[#allocation5 + $0x1b0] sm:$0xff]  ;;  %v1088_v9 = vld [vmem:[%s1868_s9 + $0x5c] sm:$0xf]  ;;  %v1383_v12 = vpack.c.bf16 %v286_v5, %v285_v2  ;;  %v814_v17 = vld [vmem:[#allocation5 + $0x1c8] sm:$0xff] }
  0x6e   : > { %267 = vadd.xlane.f32.xlu0 %v259_v7  ;;  %1362 = vmatpush3.bf16.msra.mxu1 %v1359_v60  ;;  %v351_v60 = vcombine.low %v338_v41, %v339_v45  ;;  %v573_v7 = vcombine.low %v1085_v61, %v1086_v62  ;;  %v1087_v8 = vld [vmem:[%s1868_s9 + $0x54] sm:$0xf]  ;;  %v1089_v21 = vld [vmem:[%s1868_s9 + $0x24] sm:$0xf]  ;;  %v1090_v22 = vld [vmem:[%s1868_s9 + $0x2c] sm:$0xf]  ;;  %v598_v31 = vmul.f32 %v1088_v9, %v1088_v9 }
  0x6f   : > { %1426 = vmatpush3.bf16.msra.mxu0 %v1423_v0  ;;  %1364 = vmatprep.subr.bf16.mxu1 %v1363_v10  ;;  %v1379_v0 = vpack.c.bf16 %v284_v57, %v283_v55  ;;  %v574_v18 = vcombine.low %v1087_v8, %v1088_v9  ;;  %v289_v26 = vld [vmem:[#allocation5 + $0x50] sm:$0xff]  ;;  %v290_v27 = vld [vmem:[#allocation5 + $0x58] sm:$0xff]  ;;  %v597_v29 = vmul.f32 %v1087_v8, %v1087_v8  ;;  %v817_v39 = vld [vmem:[#allocation5 + $0x1e0] sm:$0xff] }
  0x70   : > { %1428 = vmatprep.subr.bf16.mxu0 %v1427_v13  ;;  %269 = vadd.xlane.f32.xlu1 %v260_v16  ;;  %v288_v16 = vld [vmem:[#allocation5 + $0x48] sm:$0xff]  ;;  %v749_v32 = vcombine.low %v1089_v21, %v1090_v22  ;;  %v815_v33 = vld [vmem:[#allocation5 + $0x1d0] sm:$0xff]  ;;  %v1092_v44 = vld [vmem:[%s1868_s9 + $0x3c] sm:$0xf]  ;;  %v770_v56 = vmul.f32 %v1090_v22, %v1090_v22 }
  0x71   : > { %v610_v41 = vcombine.low %v597_v29, %v598_v31  ;;  %v1091_v43 = vld [vmem:[%s1868_s9 + $0x34] sm:$0xf]  ;;  %v1096_v58 = vld [vmem:[%s1868_s9 + $0x7c] sm:$0xf]  ;;  %v772_v2 = vmul.f32 %v1092_v44, %v1092_v44 }
  0x72   : > { %271 = vadd.xlane.f32.xlu0 %v261_v20  ;;  %1366 = vmatpush3.bf16.msra.mxu1 %v1363_v10  ;;  %v591_v10 = vmul.f32 %v1945_v59, %v1945_v59  ;;  %v813_v59 = vld [vmem:[#allocation5 + $0x1c0] sm:$0xff]  ;;  %v596_v20 = vmul.f32 %v1086_v62, %v1086_v62  ;;  %v293_v46 = vld [vmem:[#allocation5 + $0x70] sm:$0xff]  ;;  %v776_v9 = vmul.f32 %v1096_v58, %v1096_v58 }
  0x73   : > { %1430 = vmatpush3.bf16.msra.mxu0 %v1427_v13  ;;  %1368 = vmatprep.subr.bf16.mxu1 %v1367_v23  ;;  %v287_v13 = vld [vmem:[#allocation5 + $0x40] sm:$0xff]  ;;  %v1095_v57 = vld [vmem:[%s1868_s9 + $0x74] sm:$0xf] }
  0x74   : > { %1432 = vmatprep.subr.bf16.mxu0 %v1431_v25  ;;  %273 = vadd.xlane.f32.xlu1 %v262_v24  ;;  %v607_v63 = vcombine.low %v591_v10, %v592_v11  ;;  %v1451_v24 = vpack.c.bf16 %v814_v17, %v813_v59  ;;  %v775_v8 = vmul.f32 %v1095_v57, %v1095_v57 }
  0x76   : > { %356 = vadd.xlane.f32.xlu0 %v348_v34  ;;  %1370 = vmatpush3.bf16.msra.mxu1 %v1367_v23  ;;  %v1387_v23 = vpack.c.bf16 %v288_v16, %v287_v13  ;;  %v816_v34 = vld [vmem:[#allocation5 + $0x1d8] sm:$0xff]  ;;  %v788_v11 = vcombine.low %v775_v8, %v776_v9 }
  0x77   : > { %1434 = vmatpush3.bf16.msra.mxu0 %v1431_v25  ;;  %1372 = vmatprep.subr.bf16.mxu1 %v1371_v37  ;;  %v1455_v36 = vpack.c.bf16 %v816_v34, %v815_v33 }
  0x78   : > { %1436 = vmatprep.subr.bf16.mxu0 %v1435_v42  ;;  %358 = vadd.xlane.f32.xlu1 %v349_v47  ;;  %v1094_v47 = vld [vmem:[%s1868_s9 + $0x6c] sm:$0xf] }
  0x79   : > { %1220 = vmatmul.mubr.f32.vlgmr.msra.gmra.mrb[0].mxu1 %v1932_v52  ;;  %v812_v52 = vld [vmem:[#allocation5 + $0x1b8] sm:$0xff] }
  0x7a   : > { %360 = vadd.xlane.f32.xlu0 %v350_v49  ;;  %1374 = vmatpush3.bf16.msra.mxu1 %v1371_v37  ;;  %v1447_v15 = vpack.c.bf16 %v812_v52, %v811_v6  ;;  %v291_v37 = vld [vmem:[#allocation5 + $0x60] sm:$0xff]  ;;  %v294_v49 = vld [vmem:[#allocation5 + $0x78] sm:$0xff] }
  0x7b   : > { %1296 = vmatmul.mubr.f32.vlgmr.msra.gmra.mrb[0].mxu0 %v572_v50  ;;  %1376 = vmatprep.subr.bf16.mxu1 %v1375_v51 }
  0x7c   : > { %1438 = vmatpush3.bf16.msra.mxu0 %v1435_v42  ;;  %362 = vadd.xlane.f32.xlu1 %v351_v60  ;;  %v818_v42 = vld [vmem:[#allocation5 + $0x1e8] sm:$0xff]  ;;  %v769_v60 = vmul.f32 %v1089_v21, %v1089_v21 }
  0x7d   : > { %1440 = vmatprep.subr.bf16.mxu0 %v1439_v53  ;;  %1222 = vmatprep.mubr.f32.mxu1 %v1936_v54  ;;  %v595_v54 = vmul.f32 %v1085_v61, %v1085_v61  ;;  %v1459_v48 = vpack.c.bf16 %v818_v42, %v817_v39  ;;  %v1399_v61 = vpack.c.bf16 %v294_v49, %v293_v46 }
  0x7e   : > { %579 = vadd.xlane.f32.xlu0 %v1957_v4  ;;  %1378 = vmatpush3.bf16.msra.mxu1 %v1375_v51  ;;  %v593_v4 = vmul.f32 %v1083_v38, %v1083_v38  ;;  %v292_v38 = vld [vmem:[#allocation5 + $0x68] sm:$0xff]  ;;  %v820_v51 = vld [vmem:[#allocation5 + $0x1f8] sm:$0xff]  ;;  %v785_v5 = vcombine.low %v769_v60, %v770_v56 }
  0x7f   : > { %1298 = vmatprep.mubr.f32.mxu0 %v573_v7  ;;  %1380 = vmatprep.subr.bf16.mxu1 %v1379_v0  ;;  %v609_v35 = vcombine.low %v595_v54, %v596_v20  ;;  %v1395_v45 = vpack.c.bf16 %v292_v38, %v291_v37 }
  0x80   : > { %1442 = vmatpush3.bf16.msra.mxu0 %v1439_v53  ;;  %581 = vadd.xlane.f32.xlu1 %v572_v50  ;;  %v608_v25 = vcombine.low %v593_v4, %v594_v14  ;;  %v819_v50 = vld [vmem:[#allocation5 + $0x1f0] sm:$0xff]  ;;  %v750_v53 = vcombine.low %v1091_v43, %v1092_v44 }
  0x81   : > { %1444 = vmatprep.subr.bf16.mxu0 %v1443_v1  ;;  %1223 = vmatmul.mubr.f32.gmra.mrb[2].mxu1 %v1953_v3  ;;  %v1391_v3 = vpack.c.bf16 %v290_v27, %v289_v26  ;;  %v1463_v62 = vpack.c.bf16 %v820_v51, %v819_v50 }
  0x82   : > { %583 = vadd.xlane.f32.xlu0 %v573_v7  ;;  %1382 = vmatpush3.bf16.msra.mxu1 %v1379_v0  ;;  %v752_v0 = vcombine.low %v1095_v57, %v1096_v58  ;;  %v774_v7 = vmul.f32 %v1094_v47, %v1094_v47 }
  0x83   : > { %1299 = vmatmul.mubr.f32.gmra.mrb[2].mxu0 %v574_v18  ;;  %1384 = vmatprep.subr.bf16.mxu1 %v1383_v12 }
  0x84   : > { %1446 = vmatpush3.bf16.msra.mxu0 %v1443_v1  ;;  %585 = vadd.xlane.f32.xlu1 %v574_v18  ;;  %v771_v1 = vmul.f32 %v1091_v43, %v1091_v43 }
  0x85   : > { %1448 = vmatprep.subr.bf16.mxu0 %v1447_v15  ;;  %1257 = vmatprep.mubr.f32.mxu1 %v1880_v19  ;;  %v1093_v19 = vld [vmem:[%s1868_s9 + $0x64] sm:$0xf] }
  0x86   : > { %615 = vadd.xlane.f32.xlu0 %v607_v63  ;;  %1386 = vmatpush3.bf16.msra.mxu1 %v1383_v12  ;;  %v751_v55 = vcombine.low %v1093_v19, %v1094_v47  ;;  %v773_v6 = vmul.f32 %v1093_v19, %v1093_v19  ;;  %v786_v52 = vcombine.low %v771_v1, %v772_v2 }
  0x87   : > { %1333 = vmatprep.mubr.f32.mxu0 %v749_v32  ;;  %1388 = vmatprep.subr.bf16.mxu1 %v1387_v23 }
  0x88   : > { %1450 = vmatpush3.bf16.msra.mxu0 %v1447_v15  ;;  %617 = vadd.xlane.f32.xlu1 %v608_v25  ;;  %v787_v10 = vcombine.low %v773_v6, %v774_v7 }
  0x89   : > { %1452 = vmatprep.subr.bf16.mxu0 %v1451_v24 }
  0x8a   : > { %619 = vadd.xlane.f32.xlu0 %v609_v35  ;;  %1390 = vmatpush3.bf16.msra.mxu1 %v1387_v23 }
  0x8b   : > { %1392 = vmatprep.subr.bf16.mxu1 %v1391_v3 }
  0x8c   : > { %1454 = vmatpush3.bf16.msra.mxu0 %v1451_v24  ;;  %621 = vadd.xlane.f32.xlu1 %v610_v41 }
  0x8d   : > { %1456 = vmatprep.subr.bf16.mxu0 %v1455_v36 }
  0x8e   : > { %757 = vadd.xlane.f32.xlu0 %v749_v32  ;;  %1394 = vmatpush3.bf16.msra.mxu1 %v1391_v3 }
  0x8f   : > { %1396 = vmatprep.subr.bf16.mxu1 %v1395_v45 }
  0x90   : > { %1458 = vmatpush3.bf16.msra.mxu0 %v1455_v36  ;;  %759 = vadd.xlane.f32.xlu1 %v750_v53 }
  0x91   : > { %1460 = vmatprep.subr.bf16.mxu0 %v1459_v48 }
  0x92   : > { %761 = vadd.xlane.f32.xlu0 %v751_v55  ;;  %1398 = vmatpush3.bf16.msra.mxu1 %v1395_v45 }
  0x93   : > { %1400 = vmatprep.subr.bf16.mxu1 %v1399_v61 }
  0x94   : > { %1462 = vmatpush3.bf16.msra.mxu0 %v1459_v48  ;;  %763 = vadd.xlane.f32.xlu1 %v752_v0 }
  0x95   : > { %1464 = vmatprep.subr.bf16.mxu0 %v1463_v62 }
  0x96   : > { %793 = vadd.xlane.f32.xlu0 %v785_v5  ;;  %1402 = vmatpush3.bf16.msra.mxu1 %v1399_v61 }
  0x98   : > { %1466 = vmatpush3.bf16.msra.mxu0 %v1463_v62  ;;  %795 = vadd.xlane.f32.xlu1 %v786_v52 }
  0x99   : > { %1258 = vmatmul.mubr.f32.vlgmr.msra.gmra.mrb[0].mxu1 %v1895_v30 }
  0x9a   : > { %797 = vadd.xlane.f32.xlu0 %v787_v10  ;;  %1260 = vmatprep.mubr.f32.mxu1 %v1892_v28 }
  0x9b   : > { %1334 = vmatmul.mubr.f32.vlgmr.msra.gmra.mrb[0].mxu0 %v750_v53 }
  0x9c   : > { %1336 = vmatprep.mubr.f32.mxu0 %v751_v55  ;;  %799 = vadd.xlane.f32.xlu1 %v788_v11 }
  0x9d   : > { %1261 = vmatmul.mubr.f32.gmra.mrb[2].mxu1 %v1912_v40 }
  0x9f   : > { %1337 = vmatmul.mubr.f32.gmra.mrb[2].mxu0 %v752_v0 }
  0xeb   : > { %v232_v13 = vpop.xlane.xlu0 %231 }
  0xed   : > { %v236_v12 = vpop.xlane.xlu1 %235 }
  0xef   : > { %v234_v14 = vpop.xlane.xlu0 %233 }
  0xf1   : > { %v238_v4 = vpop.xlane.xlu1 %237 }
  0xf3   : > { %v321_v16 = vpop.xlane.xlu0 %320 }
  0xf4   : > { %v328_v35 = vadd.f32 %v321_v16, %v232_v13 }
  0xf5   : > { %v323_v15 = vpop.xlane.xlu1 %322 }
  0xf6   : > { %v329_v34 = vadd.f32 %v323_v15, %v234_v14 }
  0xf7   : > { %v325_v17 = vpop.xlane.xlu0 %324 }
  0xf8   : > { %v330_v41 = vadd.f32 %v325_v17, %v236_v12 }
  0xf9   : > { %v327_v59 = vpop.xlane.xlu1 %326 }
  0xfa   : > { %v331_v37 = vadd.f32 %v327_v59, %v238_v4 }
  0xfb   : > { %v268_v63 = vpop.xlane.xlu0 %267 }
  0xfd   : > { %v270_v18 = vpop.xlane.xlu1 %269 }
  0xff   : > { %v272_v54 = vpop.xlane.xlu0 %271 }
 0x101   : > { %v274_v30 = vpop.xlane.xlu1 %273 }
 0x103   : > { %v357_v21 = vpop.xlane.xlu0 %356 }
 0x104   : > { %v364_v42 = vadd.f32 %v357_v21, %v268_v63 }
 0x105   : > { %v359_v20 = vpop.xlane.xlu1 %358 }
 0x106   : > { %v365_v38 = vadd.f32 %v359_v20, %v270_v18  ;;  %v1097_v20 = vld [vmem:[%s2071_s2] ss:$0 sm:$0xff] }
 0x107   : > { %v361_v22 = vpop.xlane.xlu0 %360 }
 0x108   : > { %v366_v49 = vadd.f32 %v361_v22, %v272_v54 }
 0x109   : > { %v363_v28 = vpop.xlane.xlu1 %362 }
 0x10a   : > { %v367_v19 = vadd.f32 %v363_v28, %v274_v30 }
 0x10b   : > { %v580_v24 = vpop.xlane.xlu0 %579 }
 0x10c   : > { %v587_v43 = vadd.f32 %v580_v24, %v328_v35 }
 0x10d   : > { %v582_v23 = vpop.xlane.xlu1 %581 }
 0x10e   : > { %v588_v39 = vadd.f32 %v582_v23, %v329_v34 }
 0x10f   : > { %v584_v25 = vpop.xlane.xlu0 %583 }
 0x110   : > { %v589_v50 = vadd.f32 %v584_v25, %v330_v41 }
 0x111   : > { %v586_v40 = vpop.xlane.xlu1 %585 }
 0x112   : > { %v590_v47 = vadd.f32 %v586_v40, %v331_v37 }
 0x113   : > { %v616_v27 = vpop.xlane.xlu0 %615 }
 0x114   : > { %v623_v51 = vadd.f32 %v616_v27, %v364_v42 }
 0x115   : > { %v618_v26 = vpop.xlane.xlu1 %617 }
 0x116   : > { %v624_v45 = vadd.f32 %v618_v26, %v365_v38 }
 0x117   : > { %v620_v31 = vpop.xlane.xlu0 %619 }
 0x118   : > { %v625_v56 = vadd.f32 %v620_v31, %v366_v49 }
 0x119   : > { %v622_v29 = vpop.xlane.xlu1 %621 }
 0x11a   : > { %v626_v55 = vadd.f32 %v622_v29, %v367_v19 }
 0x11b   : > { %v758_v33 = vpop.xlane.xlu0 %757 }
 0x11c   : > { %v765_v53 = vadd.f32 %v758_v33, %v587_v43 }
 0x11d   : > { %v760_v32 = vpop.xlane.xlu1 %759 }
 0x11e   : > { %v766_v46 = vadd.f32 %v760_v32, %v588_v39  ;;  %v910_v61 = vmul.f32 0.001953125, %v765_v53  ;;  %v1098_v32 = vld [vmem:[%s2071_s2 + $0x1] ss:$0 sm:$0xff] }
 0x11f   : > { %v762_v36 = vpop.xlane.xlu0 %761 }
 0x120   : > { %v911_v57 = vmul.f32 0.001953125, %v766_v46  ;;  %v767_v62 = vadd.f32 %v762_v36, %v589_v50  ;;  %v918_v8 = vmul.f32 %v910_v61, %v910_v61  ;;  %v940_v25 = vmul.f32 %v1097_v20, %v910_v61 }
 0x121   : > { %v764_v3 = vpop.xlane.xlu1 %763 }
 0x122   : > { %v768_v58 = vadd.f32 %v764_v3, %v590_v47  ;;  %v919_v5 = vmul.f32 %v911_v57, %v911_v57  ;;  %v912_v9 = vmul.f32 0.001953125, %v767_v62  ;;  %v941_v23 = vmul.f32 %v1097_v20, %v911_v57 }
 0x123   : > { %v794_v48 = vpop.xlane.xlu0 %793 }
 0x124   : > { %v801_v0 = vadd.f32 %v794_v48, %v623_v51  ;;  %v913_v6 = vmul.f32 0.001953125, %v768_v58  ;;  %v920_v14 = vmul.f32 %v912_v9, %v912_v9  ;;  %v942_v41 = vmul.f32 %v1097_v20, %v912_v9 }
 0x125   : > { %v796_v44 = vpop.xlane.xlu1 %795 }
 0x126   : > { %v802_v60 = vadd.f32 %v796_v44, %v624_v45  ;;  %v914_v10 = vmul.f32 0.001953125, %v801_v0  ;;  %v921_v12 = vmul.f32 %v913_v6, %v913_v6  ;;  %v943_v36 = vmul.f32 %v1097_v20, %v913_v6 }
 0x127   : > { %v798_v2 = vpop.xlane.xlu0 %797 }
 0x128   : > { %v915_v7 = vmul.f32 0.001953125, %v802_v60  ;;  %v803_v11 = vadd.f32 %v798_v2, %v625_v56  ;;  %v922_v15 = vsub.f32 %v914_v10, %v918_v8 }
 0x129   : > { %v800_v1 = vpop.xlane.xlu1 %799 }
 0x12a   : > { %v804_v52 = vadd.f32 %v800_v1, %v626_v55  ;;  %v923_v13 = vsub.f32 %v915_v7, %v919_v5  ;;  %v916_v16 = vmul.f32 0.001953125, %v803_v11  ;;  %v926_v18 = vadd.f32 1e-05, %v922_v15 }
 0x12c   : > { %v917_v4 = vmul.f32 0.001953125, %v804_v52  ;;  %v927_v59 = vadd.f32 1e-05, %v923_v13  ;;  %v924_v63 = vsub.f32 %v916_v16, %v920_v14 }
 0x12e   : > { %v925_v17 = vsub.f32 %v917_v4, %v921_v12  ;;  %1558 = vrsqrt.f32 %v927_v59  ;;  %v928_v54 = vadd.f32 1e-05, %v924_v63 }
 0x12f   : > { %1560 = vrsqrt.f32 %v926_v18 }
 0x130   : > { %v929_v30 = vadd.f32 1e-05, %v925_v17 }
 0x132   : > { %1562 = vrsqrt.f32 %v929_v30 }
 0x133   : > { %1564 = vrsqrt.f32 %v928_v54 }
 0x138   : > { %v1559_v31 = vpop.eup %1558 }
 0x139   : > { %v1561_v3 = vpop.eup %1560 }
 0x13c   : > { %v1563_v47 = vpop.eup %1562 }
 0x13d   : > { %v1565_v48 = vpop.eup %1564 }
 0x16c   : > { %v1259_v21 = vpop.f32.mrb[0].mxu1 }
 0x16d   : > { %v535_v22 = vpop.f32.mrb[1].mxu1 }
 0x16e   : > { %v1335_v28 = vpop.f32.mrb[0].mxu0 }
 0x16f   : > { %v1467_v24 = vadd.f32 %v1335_v28, %v1259_v21  ;;  %v887_v40 = vpop.f32.mrb[1].mxu0 }
 0x170   : > { %v1468_v26 = vadd.f32 %v887_v40, %v535_v22  ;;  %v1262_v29 = vpop.f32.mrb[2].mxu1 }
 0x171   : > { %v945_v27 = vsub.f32 %v1467_v24, %v941_v23  ;;  %v545_v35 = vpop.f32.mrb[3].mxu1 }
 0x172   : > { %v944_v33 = vsub.f32 %v1468_v26, %v940_v25  ;;  %v1338_v34 = vpop.f32.mrb[2].mxu0 }
 0x173   : > { %v949_v37 = vmul.f32 %v1559_v31, %v945_v27  ;;  %v1469_v38 = vadd.f32 %v1338_v34, %v1262_v29  ;;  %v897_v39 = vpop.f32.mrb[3].mxu0 }
 0x174   : > { %v948_v42 = vmul.f32 %v1561_v3, %v944_v33  ;;  %v1470_v43 = vadd.f32 %v897_v39, %v545_v35 }
 0x175   : > { %v957_v44 = vadd.f32 %v1098_v32, %v949_v37  ;;  %v947_v19 = vsub.f32 %v1469_v38, %v943_v36 }
 0x176   : > { %v956_v45 = vadd.f32 %v1098_v32, %v948_v42  ;;  %v946_v46 = vsub.f32 %v1470_v43, %v942_v41 }
 0x177   : > { %961 = vst [vmem:[%s204_s5 + $0x8] sm:$0xff] %v957_v44  ;;  %v951_v49 = vmul.f32 %v1563_v47, %v947_v19 }
 0x178   : > { %960 = vst [vmem:[%s204_s5] sm:$0xff] %v956_v45  ;;  %v950_v50 = vmul.f32 %v1565_v48, %v946_v46 }
 0x179   : > { %v959_v51 = vadd.f32 %v1098_v32, %v951_v49 }
 0x17a   : > { %v958_v53 = vadd.f32 %v1098_v32, %v950_v50 }
 0x17b   : > { %963 = vst [vmem:[%s204_s5 + $0x18] sm:$0xff] %v959_v51 }
 0x17c   : > { %962 = vst [vmem:[%s204_s5 + $0x10] sm:$0xff] %v958_v53 }
 0x17d   : > { %1637 = shalt.err (!%p1634_p7)
}
 0x17e   : > { %s1638_s8 = scalar_lea.hbm %s2025_s29, 512  ;;  %s1642_s20 = scalar_lea.hbm %s2072_s3, 1024 }
 0x17f   : > { %p1639_p9 = scmp.ne.s32.totalorder %s2025_s29, %s1638_s8  ;;  %p1643_p5 = scmp.lt.u32.totalorder %s2025_s29, %s2072_s3 }
 0x180   : > { %p1644_p11 = scmp.lt.u32.totalorder %s1642_s20, %s1638_s8  ;;  %p1646_p4 = scmp.lt.u32.totalorder %s1638_s8, %s2025_s29 }
 0x181   : > { %p1640_p2 = pnand %p1639_p9, %p1816_p12 }
 0x182   : > { %p1645_p1 = por %p1644_p11, %p1643_p5 }
 0x183   : > { %p1641_p0 = pneg %p1640_p2 }
 0x184   : > { %p1647_p6 = por %p1646_p4, %p1645_p1 }
 0x186   : > { %p1648_p8 = pnand %p1647_p6, %p1641_p0 }
 0x188   : > { %1651 = shalt.err (!%p1648_p8)
}
 0x189   : > { %s1703_s26 = smov 128   ;;  %s1704_s5 = smov 8  }
 0x18a   : > { %1485 = dma.vmem_to_hbm [thread:$0]  (%p1816_p12), %s2020_s10, 512, %s2025_s29, %s965_s16, %s1703_s26, %s1703_s26, %s1704_s5  }
 0x18b PF: > { %s993_s11 = sand.u32 1, %s1682_s12   ;;  %p2087_p10 = scmp.ne.s32.totalorder %s2077_s19, 0 }
 0x18c   : > { %p2088_p13 = scmp.ge.s32.totalorder %s1694_s15, 2  ;;  %s994_s27 = scalar_lea.sflag [#allocation4], %s993_s11 }
 0x18e   : > { %p1496_p3 = pnand %p2088_p13, %p2087_p10 }
 0x190   : > { %1677 = dma.done.wait (!%p1496_p3), %s994_s27, 512  }
 0x191   : > { %1679 = vsyncadd (!%p1496_p3), %s994_s27, 4294966784  ;;  %p17_p7 = scmp.ge.s32.totalorder %s1781_s24, 4   ;;  %s2089_s12 = smov %s1686_s13 }
 0x192   : > { %s2090_s13 = smov %s1690_s14  ;;  %s2091_s14 = smov %s1812_s17 }
 0x193   : > { %s2092_s15 = smov %s1781_s24  ;;  %19 = sbr.rel (!%p17_p7) target bundleno = 6 (0x6), region = 84 }
 0x19a   :  { %999 = vsyncpa [#allocation3], 1 }
 0x19b   :  { %1001 = vsyncpa [#allocation3 + $0x1], 1 }
 0x19c   :  { %1002 = vsyncpa [#allocation6], 1 }
 0x19d   :  { %1003 = vsyncpa [#allocation4], 1 }
 0x19e   :  { %1005 = vsyncpa [#allocation4 + $0x1], 1 }

</bundles_post_ra>
